<compile_context>
chip_gen: v5e
topology: v5e:2x2
jax: 0.10.0
libtpu: 0.0.40
codegen_flags: <defaults>
</compile_context>

<pallas_src>
import jax
import jax.numpy as jnp
import numpy as np
from jax.experimental import pallas as pl
from jax.experimental.pallas import tpu as pltpu


# ---------------------------------------------------------------------------
# Production path: out = bn(relu(x))   (the only value the module returns)
# ---------------------------------------------------------------------------

def _bn_relu_kernel(x_ref, s_ref, b_ref, o_ref):
    # x block: (B, C, tT); s/b: (C, 1) broadcast over batch and lanes.
    o_ref[...] = jnp.maximum(x_ref[...], 0.0) * s_ref[...] + b_ref[...]


def _pick_t_tile(B, C, T, vmem_budget_bytes=8 * 1024 * 1024):
    """Largest lane-aligned T tile (dividing T) whose double-buffered in+out
    blocks fit a conservative VMEM budget; whole T if it already fits."""
    bytes_per_t_col = 2 * 2 * B * C * 4          # {x, out} x double-buffer, f32
    max_t = max(128, vmem_budget_bytes // bytes_per_t_col)
    if T <= max_t:
        return T
    t = (max_t // 128) * 128
    while t >= 128:
        if T % t == 0:
            return t
        t -= 128
    return T   # fallback: single block (raise vmem_limit_bytes if ever needed)


def res2convnet_forward(x, bn_scale, bn_shift):
    """Matches Res2ConvNetModule.forward(x): returns bn(relu(x)) (eval-mode BN).

    The Res2 branch is dead code in the PyTorch forward and is intentionally NOT
    computed here; use `res2_branch` if its intermediate is wanted."""
    B, C, T = x.shape
    tT = _pick_t_tile(B, C, T)
    grid = (pl.cdiv(T, tT),)
    return pl.pallas_call(
        _bn_relu_kernel,
        out_shape=jax.ShapeDtypeStruct((B, C, T), jnp.float32),
        grid_spec=pltpu.PrefetchScalarGridSpec(
            num_scalar_prefetch=0,
            grid=grid,
            in_specs=[
                # whole batch + all channels per step -> amortizes per-step cost
                pl.BlockSpec((B, C, tT), lambda t: (0, 0, t)),
                pl.BlockSpec((C, 1), lambda t: (0, 0)),
                pl.BlockSpec((C, 1), lambda t: (0, 0)),
            ],
            out_specs=pl.BlockSpec((B, C, tT), lambda t: (0, 0, t)),
        ),
        compiler_params=pltpu.CompilerParams(
            dimension_semantics=("parallel",)),
    )(x, bn_scale, bn_shift)


# ---------------------------------------------------------------------------
# Optional path: the Res2 branch intermediate `spo` (dead in the module forward)
# ---------------------------------------------------------------------------

def _make_res2_kernel(split_num: int, width: int, ksize: int, pad: int,
                      conv_dtype):
    def kernel(x_ref, w_ref, cbn_s_ref, cbn_b_ref, spo_ref):
        x = x_ref[0]                                    # (C, T) f32
        T = x.shape[-1]

        # Per-tap validity masks depend only on the tap offset, not the split:
        # compute once per kernel invocation (hoisted out of the split loop).
        t_idx = jax.lax.broadcasted_iota(jnp.int32, (1, T), 1)
        masks = []
        for dk in range(ksize):
            d = dk - pad
            masks.append(None if d == 0
                         else ((t_idx + d >= 0) & (t_idx + d < T)))

        sp = None
        for i in range(split_num - 1):
            spx_i = x[i * width:(i + 1) * width, :]     # channel split
            sp_in = spx_i if i == 0 else sp + spx_i     # Res2 running-sum skip

            # im2col: stack the K shifted copies along sublanes -> (K*W, T),
            # then ONE fused MXU matmul per split with the packed (W, K*W)
            # weight (contraction dim K*W instead of W, K matmuls -> 1).
            cols = []
            for dk in range(ksize):
                d = dk - pad
                if d == 0:
                    cols.append(sp_in)
                else:
                    shifted = pltpu.roll(sp_in, shift=(-d) % T, axis=1)
                    cols.append(jnp.where(masks[dk], shifted, 0.0))
            x_col = jnp.concatenate(cols, axis=0).astype(conv_dtype)
            y = jnp.dot(w_ref[i].astype(conv_dtype), x_col,
                        preferred_element_type=jnp.float32)

            # per-split eval-mode BatchNorm1d(width) + ReLU
            sp = jnp.maximum(y * cbn_s_ref[i] + cbn_b_ref[i], 0.0)

            # Direct sliced store (width is sublane-aligned for f32): no
            # concatenate temporary, splits don't all stay live.
            spo_ref[0, i * width:(i + 1) * width, :] = sp

        # Last split passes through untouched.
        spo_ref[0, (split_num - 1) * width:, :] = x[(split_num - 1) * width:, :]

    return kernel


def res2_branch(x, conv_w_packed, cbn_scale, cbn_shift, *, split_num, ksize,
                conv_dtype=jnp.float32):
    """Res2 branch intermediate (the `spo` the PyTorch forward computes but
    never returns).

    conv_w_packed: (split_num-1, width, ksize*width) im2col-packed weights with
                   conv_w_packed[i][o, dk*width + c] == torch_weight[i][o, c, dk]
    conv_dtype:    pass jnp.bfloat16 on v6e/v7x for full-rate MXU matmuls
                   (accumulation stays f32 via preferred_element_type)."""
    B, C, T = x.shape
    assert C % split_num == 0
    width = C // split_num
    pad = ksize // 2
    kern = _make_res2_kernel(split_num, width, ksize, pad, conv_dtype)

    # TODO(synk): at realistic ECAPA sizes (C in the hundreds, T in the
    # thousands) tile T with a `pad`-column halo and re-derive block sizes
    # against v7x's 64 MiB VMEM; whole-T blocks are fine at these shapes.
    return pl.pallas_call(
        kern,
        out_shape=jax.ShapeDtypeStruct((B, C, T), jnp.float32),
        grid_spec=pltpu.PrefetchScalarGridSpec(
            num_scalar_prefetch=0,
            grid=(B,),                                  # parallel -> v7x 2 TCs
            in_specs=[
                pl.BlockSpec((1, C, T), lambda b: (b, 0, 0)),
                pl.BlockSpec(conv_w_packed.shape, lambda b: (0, 0, 0)),
                pl.BlockSpec(cbn_scale.shape, lambda b: (0, 0, 0)),
                pl.BlockSpec(cbn_shift.shape, lambda b: (0, 0, 0)),
            ],
            out_specs=pl.BlockSpec((1, C, T), lambda b: (b, 0, 0)),
        ),
        compiler_params=pltpu.CompilerParams(
            dimension_semantics=("parallel",)),
    )(x, conv_w_packed, cbn_scale, cbn_shift)


# ---------------------------------------------------------------------------
# Pure-JAX reference (mirrors the PyTorch module, eval-mode BN)
# ---------------------------------------------------------------------------

def _ref_forward(x, w_torch, cbn_scale, cbn_shift, bn_scale, bn_shift,
                 split_num, ksize):
    B, C, T = x.shape
    width = C // split_num
    pad = ksize // 2
    spx = [x[:, i * width:(i + 1) * width, :] for i in range(split_num)]
    sp = None
    parts = []
    for i in range(split_num - 1):
        sp_in = spx[i] if i == 0 else sp + spx[i]
        y = jax.lax.conv_general_dilated(
            sp_in, w_torch[i], window_strides=(1,), padding=[(pad, pad)],
            dimension_numbers=('NCH', 'OIH', 'NCH'))
        y = y * cbn_scale[i][None] + cbn_shift[i][None]
        sp = jnp.maximum(y, 0.0)
        parts.append(sp)
    parts.append(spx[-1])
    spo = jnp.concatenate(parts, axis=1)
    out = jnp.maximum(x, 0.0) * bn_scale[None] + bn_shift[None]
    return out, spo


if __name__ == "__main__":
    B, C, T = 2, 32, 128
    split_num, ksize = 4, 3
    width = C // split_num
    eps = 1e-5

    key = jax.random.PRNGKey(0)
    ks = jax.random.split(key, 10)

    # Conv1d weights, PyTorch layout (out, in, K) per branch.
    w_torch = 0.1 * jax.random.normal(
        ks[0], (split_num - 1, width, width, ksize), jnp.float32)
    # im2col-packed: (S-1, W_out, K*W_in), block dk contiguous along columns.
    conv_w_packed = jnp.transpose(w_torch, (0, 1, 3, 2)).reshape(
        split_num - 1, width, ksize * width)

    # Per-branch BatchNorm1d(width) params + running stats (eval mode).
    cbn_gamma = 1.0 + 0.1 * jax.random.normal(ks[1], (split_num - 1, width))
    cbn_beta = 0.1 * jax.random.normal(ks[2], (split_num - 1, width))
    cbn_mean = 0.1 * jax.random.normal(ks[3], (split_num - 1, width))
    cbn_var = jax.random.uniform(ks[4], (split_num - 1, width),
                                 minval=0.5, maxval=1.5)
    cbn_inv = jax.lax.rsqrt(cbn_var + eps)
    cbn_scale = (cbn_gamma * cbn_inv)[..., None]            # (S-1, W, 1)
    cbn_shift = (cbn_beta - cbn_mean * cbn_gamma * cbn_inv)[..., None]

    # Final BatchNorm1d(C) params + running stats (eval mode).
    bn_gamma = 1.0 + 0.1 * jax.random.normal(ks[5], (C,))
    bn_beta = 0.1 * jax.random.normal(ks[6], (C,))
    bn_mean = 0.1 * jax.random.normal(ks[7], (C,))
    bn_var = jax.random.uniform(ks[8], (C,), minval=0.5, maxval=1.5)
    bn_inv = jax.lax.rsqrt(bn_var + eps)
    bn_scale = (bn_gamma * bn_inv)[:, None]                 # (C, 1)
    bn_shift = (bn_beta - bn_mean * bn_gamma * bn_inv)[:, None]

    x = jax.random.normal(ks[9], (B, C, T), jnp.float32)

    # Production path: exactly what the PyTorch forward returns.
    out = jax.block_until_ready(res2convnet_forward(x, bn_scale, bn_shift))

    # Optional Res2-branch kernel (not part of the returned value).
    spo = jax.block_until_ready(
        res2_branch(x, conv_w_packed, cbn_scale, cbn_shift,
                    split_num=split_num, ksize=ksize))

    ref_out, ref_spo = _ref_forward(x, w_torch, cbn_scale, cbn_shift,
                                    bn_scale, bn_shift, split_num, ksize)
    np.testing.assert_allclose(np.asarray(out), np.asarray(ref_out),
                               rtol=1e-5, atol=1e-5)
    np.testing.assert_allclose(np.asarray(spo), np.asarray(ref_spo),
                               rtol=1e-4, atol=1e-4)

    print("KERNEL_OK")
</pallas_src>

<mosaic_0001>
module attributes {stable_mosaic.version = 11 : i64} {
  func.func @_bn_relu_kernel(%arg0: i32, %arg1: memref<2x32x128xf32, #tpu.memory_space<vmem>>, %arg2: memref<32x1xf32, #tpu.memory_space<vmem>>, %arg3: memref<32x1xf32, #tpu.memory_space<vmem>>, %arg4: memref<2x32x128xf32, #tpu.memory_space<vmem>>) attributes {dimension_semantics = [#tpu.dimension_semantics<parallel>], iteration_bounds = array<i64: 1>, scalar_prefetch = 0 : i64, scratch_operands = 0 : i64, tpu.core_type = #tpu.core_type<tc>, window_params = [{transform_indices = @transform_0, window_bounds = array<i64: 2, 32, 128>}, {pipeline_mode = #tpu.pipeline_mode<synchronous>, transform_indices = @transform_1, window_bounds = array<i64: 32, 1>}, {pipeline_mode = #tpu.pipeline_mode<synchronous>, transform_indices = @transform_2, window_bounds = array<i64: 32, 1>}, {transform_indices = @transform_3, window_bounds = array<i64: 2, 32, 128>}]} {
    %c0 = arith.constant 0 : index
    %c0_0 = arith.constant 0 : index
    %c0_1 = arith.constant 0 : index
    %0 = vector.load %arg1[%c0, %c0_0, %c0_1] : memref<2x32x128xf32, #tpu.memory_space<vmem>>, vector<2x32x128xf32>
    %cst = arith.constant 0.000000e+00 : f32
    %1 = vector.broadcast %cst : f32 to vector<2x32x128xf32>
    %2 = arith.maximumf %0, %1 : vector<2x32x128xf32>
    %c0_2 = arith.constant 0 : index
    %c0_3 = arith.constant 0 : index
    %3 = vector.load %arg2[%c0_2, %c0_3] : memref<32x1xf32, #tpu.memory_space<vmem>>, vector<32x1xf32>
    %4 = vector.shape_cast %3 : vector<32x1xf32> to vector<1x32x1xf32>
    %5 = vector.broadcast %4 : vector<1x32x1xf32> to vector<2x32x128xf32>
    %6 = arith.mulf %2, %5 : vector<2x32x128xf32>
    %c0_4 = arith.constant 0 : index
    %c0_5 = arith.constant 0 : index
    %7 = vector.load %arg3[%c0_4, %c0_5] : memref<32x1xf32, #tpu.memory_space<vmem>>, vector<32x1xf32>
    %8 = vector.shape_cast %7 : vector<32x1xf32> to vector<1x32x1xf32>
    %9 = vector.broadcast %8 : vector<1x32x1xf32> to vector<2x32x128xf32>
    %10 = arith.addf %6, %9 : vector<2x32x128xf32>
    %c0_6 = arith.constant 0 : index
    %c0_7 = arith.constant 0 : index
    %c0_8 = arith.constant 0 : index
    %11 = vector.load %arg4[%c0_6, %c0_7, %c0_8] : memref<2x32x128xf32, #tpu.memory_space<vmem>>, vector<2x32x128xf32>
    tpu.vector_store %arg4[%c0_6, %c0_7, %c0_8], %10 {strides = array<i32>} : memref<2x32x128xf32, #tpu.memory_space<vmem>>, vector<2x32x128xf32>,
    return
  }
  func.func @transform_0(%arg0: i32) -> (i32, i32, i32) {
    %c0_i32 = arith.constant 0 : i32
    %c0_i32_0 = arith.constant 0 : i32
    %c0_i32_1 = arith.constant 0 : i32
    return %c0_i32, %c0_i32_0, %arg0 : i32, i32, i32
  }
  func.func @transform_1(%arg0: i32) -> (i32, i32) {
    %c0_i32 = arith.constant 0 : i32
    %c0_i32_0 = arith.constant 0 : i32
    %c0_i32_1 = arith.constant 0 : i32
    return %c0_i32, %c0_i32_0 : i32, i32
  }
  func.func @transform_2(%arg0: i32) -> (i32, i32) {
    %c0_i32 = arith.constant 0 : i32
    %c0_i32_0 = arith.constant 0 : i32
    %c0_i32_1 = arith.constant 0 : i32
    return %c0_i32, %c0_i32_0 : i32, i32
  }
  func.func @transform_3(%arg0: i32) -> (i32, i32, i32) {
    %c0_i32 = arith.constant 0 : i32
    %c0_i32_0 = arith.constant 0 : i32
    %c0_i32_1 = arith.constant 0 : i32
    return %c0_i32, %c0_i32_0, %arg0 : i32, i32, i32
  }
}

</mosaic_0001>

<bundles_post_ra>
// kernel: tpu_custom_call.1
= control target key start
LH: loop header
LB: loop body
LE: loop exit
PB: predicated region body
PF: predicated region fallthrough
CT: control target
= control target key end

     0   :  { %v154_v2 = vmov 0   ;;  %s229_s0 = inlined_call_operand.vmem [shape: f32[2,32,128], index: 0, kind: input, shape index: {}]   ;;  %s230_s1 = inlined_call_operand.vmem [shape: f32[32,1], index: 1, kind: input, shape index: {}]   ;;  %s231_s2 = inlined_call_operand.vmem [shape: f32[32,1], index: 2, kind: input, shape index: {}]   ;;  %s232_s3 = inlined_call_operand.hbm [shape: f32[2,32,128], index: 3, kind: output, shape index: {}]  }
   0x1   :  { %v33_v0 = vld [vmem:[%s230_s1 + $0x10] sm:$0xff]  ;;  %v31_v1 = vld [vmem:[%s230_s1] sm:$0xff]  ;;  %126 = vset.pattern.permute.xlu1 %v154_v2  ;;  %125 = vset.pattern.permute.xlu0 %v154_v2 }
   0x2   :  { %47 = vperm.xlu1 %126, %v33_v0   ;;  %37 = vperm.xlu0 %125, %v31_v1   ;;  %v63_v3 = vld [vmem:[%s231_s2] sm:$0xff] }
   0x3   :  { %8 = vsyncpa [#allocation3], 0  ;;  %127 = vset.pattern.permute.xlu2 %v154_v2  ;;  %v34_v4 = vld [vmem:[%s230_s1 + $0x18] sm:$0xff]  ;;  %v32_v5 = vld [vmem:[%s230_s1 + $0x8] sm:$0xff]  ;;  %s155_s15 = smov [#allocation2]   ;;  %s109_s18 = sshll.u32 %s232_s3, 4  ;;  %s110_s18 = int_to_ptr.hbm [resolvable:$true] %s109_s18 }
   0x4   :  { %69 = vperm.xlu2 %127, %v63_v3   ;;  %v64_v6 = vld [vmem:[%s231_s2 + $0x8] sm:$0xff]  ;;  %v66_v7 = vld [vmem:[%s231_s2 + $0x18] sm:$0xff]  ;;  %v65_v8 = vld [vmem:[%s231_s2 + $0x10] sm:$0xff]  ;;  %s107_s16 = sshll.u32 %s155_s15, 4  ;;  %s156_s19 = smov 128   ;;  %s108_s16 = int_to_ptr.vmem [resolvable:$true] %s107_s16 }
   0x5   :  { %v15_v9 = vld [vmem:[%s229_s0] sm:$0xff]  ;;  %v16_v18 = vld [vmem:[%s229_s0 + $0x8] sm:$0xff]  ;;  %v17_v24 = vld [vmem:[%s229_s0 + $0x10] sm:$0xff]  ;;  %s157_s20 = smov 8  }
   0x6   :  { %v19_v10 = vld [vmem:[%s229_s0 + $0x20] sm:$0xff]  ;;  %v23_v11 = vmax.f32 %v15_v9, 0.0  ;;  %v20_v19 = vld [vmem:[%s229_s0 + $0x28] sm:$0xff]  ;;  %v24_v22 = vmax.f32 %v16_v18, 0.0  ;;  %v18_v26 = vld [vmem:[%s229_s0 + $0x18] sm:$0xff]  ;;  %v25_v32 = vmax.f32 %v17_v24, 0.0 }
   0x7   :  { %v27_v12 = vmax.f32 %v19_v10, 0.0  ;;  %v28_v23 = vmax.f32 %v20_v19, 0.0  ;;  %v22_v27 = vld [vmem:[%s229_s0 + $0x38] sm:$0xff]  ;;  %v21_v29 = vld [vmem:[%s229_s0 + $0x30] sm:$0xff]  ;;  %v26_v34 = vmax.f32 %v18_v26, 0.0 }
   0x8   :  { %v30_v35 = vmax.f32 %v22_v27, 0.0  ;;  %v29_v38 = vmax.f32 %v21_v29, 0.0 }
   0xa   :  { %52 = vperm.xlu1 %126, %v34_v4   ;;  %42 = vperm.xlu0 %125, %v32_v5  }
   0xc   :  { %74 = vperm.xlu2 %127, %v64_v6  }
  0x12   :  { %84 = vperm.xlu1 %126, %v66_v7   ;;  %79 = vperm.xlu0 %125, %v65_v8  }
  0x5e   :  { %v70_v13 = vpop.permute.xlu2 %69 }
  0x66   :  { %v75_v33 = vpop.permute.xlu2 %74 }
  0x74   :  { %v48_v14 = vpop.permute.xlu1 %47  ;;  %v38_v15 = vpop.permute.xlu0 %37 }
  0x75   :  { %v55_v16 = vmul.f32 %v38_v15, %v23_v11  ;;  %v59_v17 = vmul.f32 %v38_v15, %v27_v12  ;;  %v57_v39 = vmul.f32 %v48_v14, %v25_v32  ;;  %v61_v42 = vmul.f32 %v48_v14, %v29_v38 }
  0x77   :  { %v87_v20 = vadd.f32 %v70_v13, %v55_v16  ;;  %v91_v21 = vadd.f32 %v70_v13, %v59_v17 }
  0x79   :  { %95 = vst [vmem:[#allocation2] sm:$0xff] %v87_v20 }
  0x7a   :  { %99 = vst [vmem:[#allocation2 + $0x20] sm:$0xff] %v91_v21 }
  0x7c   :  { %v53_v25 = vpop.permute.xlu1 %52  ;;  %v43_v28 = vpop.permute.xlu0 %42 }
  0x7d   :  { %v56_v30 = vmul.f32 %v43_v28, %v24_v22  ;;  %v60_v31 = vmul.f32 %v43_v28, %v28_v23  ;;  %v58_v40 = vmul.f32 %v53_v25, %v26_v34  ;;  %v62_v41 = vmul.f32 %v53_v25, %v30_v35 }
  0x7f   :  { %v88_v36 = vadd.f32 %v75_v33, %v56_v30  ;;  %v92_v37 = vadd.f32 %v75_v33, %v60_v31 }
  0x81   :  { %96 = vst [vmem:[#allocation2 + $0x8] sm:$0xff] %v88_v36 }
  0x82   :  { %100 = vst [vmem:[#allocation2 + $0x28] sm:$0xff] %v92_v37 }
  0x84   :  { %v85_v43 = vpop.permute.xlu1 %84  ;;  %v80_v44 = vpop.permute.xlu0 %79 }
  0x85   :  { %v90_v45 = vadd.f32 %v85_v43, %v58_v40  ;;  %v94_v46 = vadd.f32 %v85_v43, %v62_v41  ;;  %v89_v47 = vadd.f32 %v80_v44, %v57_v39  ;;  %v93_v48 = vadd.f32 %v80_v44, %v61_v42 }
  0x87   :  { %98 = vst [vmem:[#allocation2 + $0x18] sm:$0xff] %v90_v45 }
  0x88   :  { %102 = vst [vmem:[#allocation2 + $0x38] sm:$0xff] %v94_v46 }
  0x89   :  { %97 = vst [vmem:[#allocation2 + $0x10] sm:$0xff] %v89_v47 }
  0x8a   :  { %101 = vst [vmem:[#allocation2 + $0x30] sm:$0xff] %v93_v48 }
  0x8b   :  { %115 = dma.vmem_to_hbm [thread:$0]  %s108_s16, 1024, %s110_s18, [#allocation3], %s156_s19, %s156_s19, %s157_s20  }
  0x8c   :  { %152 = dma.done.wait [#allocation3], 1024  }
  0x8d   :  { %153 = vsyncadd [#allocation3], 4294966272 }
  0x8e   :  { %120 = vsyncpa [#allocation3], 1 }

</bundles_post_ra>
